<compile_context>
chip_gen: v5e
topology: v5e:2x2
jax: 0.10.0
libtpu: 0.0.40
codegen_flags: <defaults>
</compile_context>

<pallas_src>
import functools
import math

import jax
import jax.numpy as jnp
from jax.experimental import pallas as pl
from jax.experimental.pallas import tpu as pltpu

_HALF_LOG_2PI = 0.5 * math.log(2.0 * math.pi)
_LANE = 128
# softplus(_RHO_PAD) == 1.0  =>  log(sigma) == 0 on padded lanes (no mask needed).
_RHO_PAD = math.log(math.expm1(1.0))

_VMEM = pl.BlockSpec(memory_space=pltpu.MemorySpace.VMEM)
_SMEM = pl.BlockSpec(memory_space=pltpu.MemorySpace.SMEM)


# --------------------------------------------------------------------------
# In-kernel helpers
# --------------------------------------------------------------------------
def _stable_softplus(x):
    # Numerically stable softplus (no inf for large rho).
    return jnp.where(x > 20.0, x, jnp.log1p(jnp.exp(jnp.minimum(x, 20.0))))


def _lane_tile(a, n):
    # Repeat `a` n times along the (128-aligned) lane axis.
    if n == 1:
        return a
    return jnp.concatenate([a] * n, axis=1)


# --------------------------------------------------------------------------
# Kernels
# --------------------------------------------------------------------------
def _elbo_kernel(x_ref, tgt_ref, wmu_ref, wrho_ref, bmu_ref, brho_ref,
                 weps_ref, beps_ref, loss_ref,
                 *, n_samples, inv_bd, kw, inv_ns):
    """All n_samples ELBO terms in one invocation; one wide MXU matmul."""
    w_sig = _stable_softplus(wrho_ref[...])          # (d_in, P)      P = d_out_pad
    b_sig = _stable_softplus(brho_ref[...])          # (1,   P)

    w_eps = weps_ref[...]                            # (d_in, n*P)
    b_eps = beps_ref[...]                            # (1,   n*P)

    # Reparameterized weights for ALL samples, laid out sample-major on lanes.
    w_all = _lane_tile(wmu_ref[...], n_samples) + _lane_tile(w_sig, n_samples) * w_eps
    b_all = _lane_tile(bmu_ref[...], n_samples) + _lane_tile(b_sig, n_samples) * b_eps

    # Forward for every sample with a single f32 MXU call: (B,d_in)@(d_in,n*P).
    y = jnp.dot(x_ref[...], w_all, preferred_element_type=jnp.float32) + b_all

    # Fused MSE (padded lanes of y and target are both zero).
    diff = y - tgt_ref[...]
    sse = jnp.sum(diff * diff)

    # KL = log q - log p; the n_params*0.5*log(2pi) terms cancel.
    # Per sample: kl_s = 0.5*(sum w_s^2 - sum eps_s^2) - sum(log sigma).
    kl_quad = 0.5 * (jnp.sum(w_all * w_all - w_eps * w_eps)
                     + jnp.sum(b_all * b_all - b_eps * b_eps))
    # log(sigma) on padded lanes is exactly 0 by construction of _RHO_PAD.
    slog = jnp.sum(jnp.log(w_sig)) + jnp.sum(jnp.log(b_sig))

    loss_ref[0] = (sse * inv_bd + (kl_quad - n_samples * slog) * kw) * inv_ns


def _fwd_kernel(x_ref, wmu_ref, wrho_ref, bmu_ref, brho_ref, weps_ref, beps_ref,
                y_ref, stats_ref, *, n_params):
    """Single reparameterized forward; stats = [log_prior, log_q]."""
    w_sig = _stable_softplus(wrho_ref[...])
    b_sig = _stable_softplus(brho_ref[...])

    w_eps = weps_ref[...]
    b_eps = beps_ref[...]
    w = wmu_ref[...] + w_sig * w_eps
    b = bmu_ref[...] + b_sig * b_eps

    y = jnp.dot(x_ref[...], w, preferred_element_type=jnp.float32) + b
    y_ref[...] = y.astype(y_ref.dtype)

    sum_w2 = jnp.sum(w * w) + jnp.sum(b * b)
    sum_e2 = jnp.sum(w_eps * w_eps) + jnp.sum(b_eps * b_eps)
    slog = jnp.sum(jnp.log(w_sig)) + jnp.sum(jnp.log(b_sig))

    stats_ref[0] = -0.5 * sum_w2 - n_params * _HALF_LOG_2PI            # log prior
    stats_ref[1] = -slog - n_params * _HALF_LOG_2PI - 0.5 * sum_e2     # log q


def _sgld_kernel(x_ref, tgt_ref, wmu_ref, wrho_ref, bmu_ref, brho_ref,
                 weps_ref, beps_ref, out_ref,
                 *, n_params, inv_bd, len_ds, inv_bs):
    """SGLD loss fused to one scalar: no y writeback, no log-q work."""
    w_sig = _stable_softplus(wrho_ref[...])
    b_sig = _stable_softplus(brho_ref[...])
    w = wmu_ref[...] + w_sig * weps_ref[...]
    b = bmu_ref[...] + b_sig * beps_ref[...]

    y = jnp.dot(x_ref[...], w, preferred_element_type=jnp.float32) + b
    diff = y - tgt_ref[...]
    sse = jnp.sum(diff * diff)

    sum_w2 = jnp.sum(w * w) + jnp.sum(b * b)
    log_prior = -0.5 * sum_w2 - n_params * _HALF_LOG_2PI

    out_ref[0] = -(sse * inv_bd) * len_ds + log_prior * inv_bs


def _mse_kernel(pred_ref, tgt_ref, out_ref, *, inv_n):
    d = pred_ref[...] - tgt_ref[...]
    out_ref[0] = jnp.sum(d * d) * inv_n


# --------------------------------------------------------------------------
# pallas_call wrappers (jitted, functional)
# --------------------------------------------------------------------------
@functools.partial(jax.jit, static_argnames=("n_samples", "d_out", "kl_weight"))
def _fused_elbo(x, tgt_rep, w_mu, w_rho, b_mu, b_rho, w_eps, b_eps,
                *, n_samples, d_out, kl_weight):
    B = x.shape[0]
    kernel = functools.partial(
        _elbo_kernel, n_samples=n_samples, inv_bd=1.0 / (B * d_out),
        kw=float(kl_weight), inv_ns=1.0 / n_samples)
    loss = pl.pallas_call(
        kernel,
        out_shape=jax.ShapeDtypeStruct((1,), jnp.float32),
        in_specs=[_VMEM] * 8,
        out_specs=_SMEM,
    )(x, tgt_rep, w_mu, w_rho, b_mu, b_rho, w_eps, b_eps)
    return loss[0]


@functools.partial(jax.jit, static_argnames=("d_out",))
def bayes_linear_forward(x, w_mu, w_rho, b_mu, b_rho, w_eps, b_eps, *, d_out):
    B, d_in = x.shape
    d_out_pad = w_mu.shape[1]
    n_params = d_in * d_out + d_out
    y_pad, stats = pl.pallas_call(
        functools.partial(_fwd_kernel, n_params=n_params),
        out_shape=(jax.ShapeDtypeStruct((B, d_out_pad), jnp.float32),
                   jax.ShapeDtypeStruct((2,), jnp.float32)),
        in_specs=[_VMEM] * 7,
        out_specs=(_VMEM, _SMEM),
    )(x, w_mu, w_rho, b_mu, b_rho, w_eps, b_eps)
    return y_pad[:, :d_out], stats[0], stats[1]


@functools.partial(jax.jit,
                   static_argnames=("d_out", "len_dataset", "batch_size"))
def _fused_sgld(x, tgt_pad, w_mu, w_rho, b_mu, b_rho, w_eps, b_eps,
                *, d_out, len_dataset, batch_size):
    B, d_in = x.shape
    n_params = d_in * d_out + d_out
    out = pl.pallas_call(
        functools.partial(_sgld_kernel, n_params=n_params,
                          inv_bd=1.0 / (B * d_out),
                          len_ds=float(len_dataset),
                          inv_bs=1.0 / float(batch_size)),
        out_shape=jax.ShapeDtypeStruct((1,), jnp.float32),
        in_specs=[_VMEM] * 8,
        out_specs=_SMEM,
    )(x, tgt_pad, w_mu, w_rho, b_mu, b_rho, w_eps, b_eps)
    return out[0]


def _pad2d(a, row_mult=8, lane_mult=_LANE):
    r, c = a.shape
    rp = (-r) % row_mult
    cp = (-c) % lane_mult
    if rp or cp:
        a = jnp.pad(a, ((0, rp), (0, cp)))
    return a


@jax.jit
def mse_criterion(pred, target):
    numel = pred.shape[0] * pred.shape[1]
    p = _pad2d(pred.astype(jnp.float32))
    t = _pad2d(target.astype(jnp.float32))
    out = pl.pallas_call(
        functools.partial(_mse_kernel, inv_n=1.0 / numel),
        out_shape=jax.ShapeDtypeStruct((1,), jnp.float32),
        in_specs=[_VMEM, _VMEM],
        out_specs=_SMEM,
    )(p, t)
    return out[0]


# --------------------------------------------------------------------------
# BModule: faithful port of the PyTorch base class
# --------------------------------------------------------------------------
class BModule:

    def __init__(self):
        self.is_variational = False
        self._modules = {}

    def forward(self, x):
        # Abstract in the reference module; concrete subclasses supply the
        # Pallas forward.
        raise NotImplementedError()

    def __call__(self, x):
        return self.forward(x)

    def elbo_estimator(self, data, target, n_samples, criterion, len_dataset,
                       batch_size, batch_idx=None, weight_type='Graves'):
        self.is_variational = True
        loss = 0.0
        for _ in range(n_samples):
            outputs = self(data)
            loss += criterion(outputs, target)
            loss += self.kl_divergence() * self.complexity_cost_weight(
                len_dataset, batch_size, batch_idx, weight_type)
        return loss / n_samples

    def sgld_estimator(self, data, target, criterion, len_dataset, batch_size):
        self.is_variational = False
        loss = 0.0
        outputs = self(data)
        loss -= criterion(outputs, target) * len_dataset
        for _, layer in self._modules.items():
            loss += layer.log_prior / batch_size
        return loss

    def kl_divergence(self):
        kl_divergence = 0.0
        for _, layer in self._modules.items():
            kl_divergence += layer.log_variational_posterior - layer.log_prior
        return kl_divergence

    def complexity_cost_weight(self, len_dataset, batch_size, batch_idx=None,
                               weight_type='Graves'):
        M = int(len_dataset / batch_size)
        if weight_type == 'Graves':
            return 1 / (M * batch_size)
        elif weight_type == 'Blundell':
            pi_i = 2 ** (M - batch_idx) / (2 ** M - 1)
            return pi_i / batch_size
        else:
            raise NotImplementedError()


# --------------------------------------------------------------------------
# Concrete Bayesian linear layer / net (Pallas-backed, lane-dense storage)
# --------------------------------------------------------------------------
class PallasBayesianLinear:
    """Mean-field Gaussian Bayesian linear layer with lane-padded parameters."""

    def __init__(self, d_in, d_out, key):
        self.d_in = d_in
        self.d_out = d_out
        self.d_out_pad = ((d_out + _LANE - 1) // _LANE) * _LANE
        pad = self.d_out_pad - d_out
        k_w, k_b, self._key = jax.random.split(key, 3)
        w_mu = 0.1 * jax.random.normal(k_w, (d_in, d_out), jnp.float32)
        b_mu = 0.1 * jax.random.normal(k_b, (1, d_out), jnp.float32)
        # Padding scheme (mask-free kernels):
        #   mu   -> 0, eps -> 0  => sampled w on padded lanes is exactly 0
        #   rho  -> softplus^-1(1) => sigma=1, log(sigma)=0 on padded lanes
        self.w_mu = jnp.pad(w_mu, ((0, 0), (0, pad)))
        self.b_mu = jnp.pad(b_mu, ((0, 0), (0, pad)))
        self.w_rho = jnp.pad(jnp.full((d_in, d_out), -3.0, jnp.float32),
                             ((0, 0), (0, pad)), constant_values=_RHO_PAD)
        self.b_rho = jnp.pad(jnp.full((1, d_out), -3.0, jnp.float32),
                             ((0, 0), (0, pad)), constant_values=_RHO_PAD)
        # Attributes read by the generic BModule machinery.
        self.log_prior = jnp.float32(0.0)
        self.log_variational_posterior = jnp.float32(0.0)

    def draw_eps(self, n_samples):
        # Host-side reparameterization noise; padded lanes are exactly zero.
        # Keys are split per call => no stream overlap across training steps.
        self._key, k_w, k_b = jax.random.split(self._key, 3)
        pad = self.d_out_pad - self.d_out
        w_eps = jax.random.normal(k_w, (self.d_in, n_samples, self.d_out),
                                  jnp.float32)
        b_eps = jax.random.normal(k_b, (1, n_samples, self.d_out), jnp.float32)
        w_eps = jnp.pad(w_eps, ((0, 0), (0, 0), (0, pad))).reshape(
            self.d_in, n_samples * self.d_out_pad)
        b_eps = jnp.pad(b_eps, ((0, 0), (0, 0), (0, pad))).reshape(
            1, n_samples * self.d_out_pad)
        return w_eps, b_eps

    def pad_and_tile_target(self, target, n_samples):
        t = jnp.pad(target.astype(jnp.float32),
                    ((0, 0), (0, self.d_out_pad - self.d_out)))
        if n_samples == 1:
            return t
        return jnp.tile(t, (1, n_samples))

    def __call__(self, x):
        # Generic object-oriented path (eager; not used inside jit).
        w_eps, b_eps = self.draw_eps(1)
        y, logp, logq = bayes_linear_forward(
            x, self.w_mu, self.w_rho, self.b_mu, self.b_rho, w_eps, b_eps,
            d_out=self.d_out)
        self.log_prior = logp
        self.log_variational_posterior = logq
        return y


class BayesianNet(BModule):

    def __init__(self, d_in, d_out, key):
        super().__init__()
        self.linear = PallasBayesianLinear(d_in, d_out, key)
        self._modules['linear'] = self.linear

    def forward(self, x):
        return self.linear(x)

    def elbo_estimator(self, data, target, n_samples, criterion, len_dataset,
                       batch_size, batch_idx=None, weight_type='Graves'):
        # Fused path: ONE pallas_call covering every sample (single wide MXU
        # matmul, fused MSE + KL). Falls back to the generic BModule loop for
        # any criterion other than the built-in MSE.
        if criterion is not None and criterion is not mse_criterion:
            return super().elbo_estimator(data, target, n_samples, criterion,
                                          len_dataset, batch_size, batch_idx,
                                          weight_type)
        self.is_variational = True
        lyr = self.linear
        kw = self.complexity_cost_weight(len_dataset, batch_size, batch_idx,
                                         weight_type)
        w_eps, b_eps = lyr.draw_eps(n_samples)
        tgt_rep = lyr.pad_and_tile_target(target, n_samples)
        return _fused_elbo(data, tgt_rep, lyr.w_mu, lyr.w_rho, lyr.b_mu,
                           lyr.b_rho, w_eps, b_eps,
                           n_samples=n_samples, d_out=lyr.d_out,
                           kl_weight=float(kw))

    def sgld_estimator(self, data, target, criterion, len_dataset, batch_size):
        if criterion is not None and criterion is not mse_criterion:
            return super().sgld_estimator(data, target, criterion,
                                          len_dataset, batch_size)
        self.is_variational = False
        lyr = self.linear
        w_eps, b_eps = lyr.draw_eps(1)
        tgt_pad = lyr.pad_and_tile_target(target, 1)
        return _fused_sgld(data, tgt_pad, lyr.w_mu, lyr.w_rho, lyr.b_mu,
                           lyr.b_rho, w_eps, b_eps,
                           d_out=lyr.d_out,
                           len_dataset=float(len_dataset),
                           batch_size=float(batch_size))


# --------------------------------------------------------------------------
if __name__ == "__main__":
    key = jax.random.PRNGKey(0)
    k_x, k_t, k_p = jax.random.split(key, 3)

    B, D_IN, D_OUT = 8, 32, 16
    data = jax.random.normal(k_x, (B, D_IN), jnp.float32)
    target = jax.random.normal(k_t, (B, D_OUT), jnp.float32)

    net = BayesianNet(D_IN, D_OUT, k_p)

    # Fused ELBO path (single pallas_call: all samples, one MXU matmul, MSE+KL).
    elbo = net.elbo_estimator(data, target, n_samples=2, criterion=mse_criterion,
                              len_dataset=80, batch_size=B, weight_type='Graves')
    jax.block_until_ready(elbo)

    # Fused SGLD path (scalar-only kernel, no y writeback / log-q work).
    sgld = net.sgld_estimator(data, target, mse_criterion,
                              len_dataset=80, batch_size=B)
    jax.block_until_ready(sgld)

    # Also exercise the generic (unfused) BModule machinery once: forward
    # kernel via __call__, standalone MSE kernel, KL from layer attributes.
    elbo_generic = BModule.elbo_estimator(net, data, target, 1, mse_criterion,
                                          80, B, weight_type='Graves')
    jax.block_until_ready(elbo_generic)

    ok = (bool(jnp.isfinite(elbo)) and bool(jnp.isfinite(sgld))
          and bool(jnp.isfinite(elbo_generic)))
    assert ok, (elbo, sgld, elbo_generic)
    print("KERNEL_OK")
</pallas_src>

<mosaic_0001>
module attributes {stable_mosaic.version = 11 : i64} {
  func.func @_elbo_kernel(%arg0: memref<8x32xf32, #tpu.memory_space<vmem>>, %arg1: memref<8x256xf32, #tpu.memory_space<vmem>>, %arg2: memref<32x128xf32, #tpu.memory_space<vmem>>, %arg3: memref<32x128xf32, #tpu.memory_space<vmem>>, %arg4: memref<1x128xf32, #tpu.memory_space<vmem>>, %arg5: memref<1x128xf32, #tpu.memory_space<vmem>>, %arg6: memref<32x256xf32, #tpu.memory_space<vmem>>, %arg7: memref<1x256xf32, #tpu.memory_space<vmem>>, %arg8: memref<1xf32, #tpu.memory_space<smem>>) attributes {dimension_semantics = [], scalar_prefetch = 0 : i64, scratch_operands = 0 : i64, tpu.core_type = #tpu.core_type<tc>} {
    %c0 = arith.constant 0 : index
    %c0_0 = arith.constant 0 : index
    %0 = vector.load %arg3[%c0, %c0_0] : memref<32x128xf32, #tpu.memory_space<vmem>>, vector<32x128xf32>
    %cst = arith.constant 2.000000e+01 : f32
    %1 = vector.broadcast %cst : f32 to vector<32x128xf32>
    %2 = arith.cmpf ogt, %0, %1 : vector<32x128xf32>
    %cst_1 = arith.constant 2.000000e+01 : f32
    %3 = vector.broadcast %cst_1 : f32 to vector<32x128xf32>
    %4 = arith.minimumf %0, %3 : vector<32x128xf32>
    %5 = math.exp %4 : vector<32x128xf32>
    %6 = math.log1p %5 : vector<32x128xf32>
    %7 = arith.select %2, %0, %6 : vector<32x128xi1>, vector<32x128xf32>
    %c0_2 = arith.constant 0 : index
    %c0_3 = arith.constant 0 : index
    %8 = vector.load %arg5[%c0_2, %c0_3] : memref<1x128xf32, #tpu.memory_space<vmem>>, vector<1x128xf32>
    %cst_4 = arith.constant 2.000000e+01 : f32
    %9 = vector.broadcast %cst_4 : f32 to vector<1x128xf32>
    %10 = arith.cmpf ogt, %8, %9 : vector<1x128xf32>
    %cst_5 = arith.constant 2.000000e+01 : f32
    %11 = vector.broadcast %cst_5 : f32 to vector<1x128xf32>
    %12 = arith.minimumf %8, %11 : vector<1x128xf32>
    %13 = math.exp %12 : vector<1x128xf32>
    %14 = math.log1p %13 : vector<1x128xf32>
    %15 = arith.select %10, %8, %14 : vector<1x128xi1>, vector<1x128xf32>
    %c0_6 = arith.constant 0 : index
    %c0_7 = arith.constant 0 : index
    %16 = vector.load %arg6[%c0_6, %c0_7] : memref<32x256xf32, #tpu.memory_space<vmem>>, vector<32x256xf32>
    %c0_8 = arith.constant 0 : index
    %c0_9 = arith.constant 0 : index
    %17 = vector.load %arg7[%c0_8, %c0_9] : memref<1x256xf32, #tpu.memory_space<vmem>>, vector<1x256xf32>
    %c0_10 = arith.constant 0 : index
    %c0_11 = arith.constant 0 : index
    %18 = vector.load %arg2[%c0_10, %c0_11] : memref<32x128xf32, #tpu.memory_space<vmem>>, vector<32x128xf32>
    %19 = tpu.concatenate %18, %18 in 1 : vector<32x128xf32>, vector<32x128xf32> -> vector<32x256xf32>
    %20 = tpu.concatenate %7, %7 in 1 : vector<32x128xf32>, vector<32x128xf32> -> vector<32x256xf32>
    %21 = arith.mulf %20, %16 : vector<32x256xf32>
    %22 = arith.addf %19, %21 : vector<32x256xf32>
    %c0_12 = arith.constant 0 : index
    %c0_13 = arith.constant 0 : index
    %23 = vector.load %arg4[%c0_12, %c0_13] : memref<1x128xf32, #tpu.memory_space<vmem>>, vector<1x128xf32>
    %24 = tpu.concatenate %23, %23 in 1 : vector<1x128xf32>, vector<1x128xf32> -> vector<1x256xf32>
    %25 = tpu.concatenate %15, %15 in 1 : vector<1x128xf32>, vector<1x128xf32> -> vector<1x256xf32>
    %26 = arith.mulf %25, %17 : vector<1x256xf32>
    %27 = arith.addf %24, %26 : vector<1x256xf32>
    %c0_14 = arith.constant 0 : index
    %c0_15 = arith.constant 0 : index
    %28 = vector.load %arg0[%c0_14, %c0_15] : memref<8x32xf32, #tpu.memory_space<vmem>>, vector<8x32xf32>
    %cst_16 = arith.constant dense<0.000000e+00> : vector<8x256xf32>
    %29 = tpu.matmul %28, %22, %cst_16 {dimension_numbers = #tpu.dot_dimension_numbers<[1], [0], [0], [1], [0, 0, 1, 1], [], []>} : vector<8x32xf32>, vector<32x256xf32>, vector<8x256xf32> -> vector<8x256xf32>
    %30 = vector.broadcast %27 : vector<1x256xf32> to vector<8x256xf32>
    %31 = arith.addf %29, %30 : vector<8x256xf32>
    %c0_17 = arith.constant 0 : index
    %c0_18 = arith.constant 0 : index
    %32 = vector.load %arg1[%c0_17, %c0_18] : memref<8x256xf32, #tpu.memory_space<vmem>>, vector<8x256xf32>
    %33 = arith.subf %31, %32 : vector<8x256xf32>
    %34 = arith.mulf %33, %33 : vector<8x256xf32>
    %35 = vector.shape_cast %34 : vector<8x256xf32> to vector<1x8x256xf32>
    %cst_19 = arith.constant dense<0.000000e+00> : vector<1xf32>
    %36 = vector.multi_reduction <add>, %35, %cst_19 [1, 2] : vector<1x8x256xf32> to vector<1xf32>
    %37 = vector.shape_cast %36 : vector<1xf32> to vector<1x1x1xf32>
    %38 = vector.extract %37[0, 0, 0] : f32 from vector<1x1x1xf32>
    %39 = arith.mulf %22, %22 : vector<32x256xf32>
    %40 = arith.mulf %16, %16 : vector<32x256xf32>
    %41 = arith.subf %39, %40 : vector<32x256xf32>
    %42 = vector.shape_cast %41 : vector<32x256xf32> to vector<1x32x256xf32>
    %cst_20 = arith.constant dense<0.000000e+00> : vector<1xf32>
    %43 = vector.multi_reduction <add>, %42, %cst_20 [1, 2] : vector<1x32x256xf32> to vector<1xf32>
    %44 = vector.shape_cast %43 : vector<1xf32> to vector<1x1x1xf32>
    %45 = vector.extract %44[0, 0, 0] : f32 from vector<1x1x1xf32>
    %46 = arith.mulf %27, %27 : vector<1x256xf32>
    %47 = arith.mulf %17, %17 : vector<1x256xf32>
    %48 = arith.subf %46, %47 : vector<1x256xf32>
    %49 = vector.shape_cast %48 : vector<1x256xf32> to vector<1x1x256xf32>
    %cst_21 = arith.constant dense<0.000000e+00> : vector<1xf32>
    %50 = vector.multi_reduction <add>, %49, %cst_21 [1, 2] : vector<1x1x256xf32> to vector<1xf32>
    %51 = vector.shape_cast %50 : vector<1xf32> to vector<1x1x1xf32>
    %52 = vector.extract %51[0, 0, 0] : f32 from vector<1x1x1xf32>
    %53 = arith.addf %45, %52 : f32
    %cst_22 = arith.constant 5.000000e-01 : f32
    %54 = arith.mulf %cst_22, %53 : f32
    %55 = math.log %7 : vector<32x128xf32>
    %56 = vector.shape_cast %55 : vector<32x128xf32> to vector<1x32x128xf32>
    %cst_23 = arith.constant dense<0.000000e+00> : vector<1xf32>
    %57 = vector.multi_reduction <add>, %56, %cst_23 [1, 2] : vector<1x32x128xf32> to vector<1xf32>
    %58 = vector.shape_cast %57 : vector<1xf32> to vector<1x1x1xf32>
    %59 = vector.extract %58[0, 0, 0] : f32 from vector<1x1x1xf32>
    %60 = math.log %15 : vector<1x128xf32>
    %61 = vector.shape_cast %60 : vector<1x128xf32> to vector<1x1x128xf32>
    %cst_24 = arith.constant dense<0.000000e+00> : vector<1xf32>
    %62 = vector.multi_reduction <add>, %61, %cst_24 [1, 2] : vector<1x1x128xf32> to vector<1xf32>
    %63 = vector.shape_cast %62 : vector<1xf32> to vector<1x1x1xf32>
    %64 = vector.extract %63[0, 0, 0] : f32 from vector<1x1x1xf32>
    %65 = arith.addf %59, %64 : f32
    %cst_25 = arith.constant 7.812500e-03 : f32
    %66 = arith.mulf %38, %cst_25 : f32
    %cst_26 = arith.constant 2.000000e+00 : f32
    %67 = arith.mulf %cst_26, %65 : f32
    %68 = arith.subf %54, %67 : f32
    %cst_27 = arith.constant 1.250000e-02 : f32
    %69 = arith.mulf %68, %cst_27 : f32
    %70 = arith.addf %66, %69 : f32
    %cst_28 = arith.constant 5.000000e-01 : f32
    %71 = arith.mulf %70, %cst_28 : f32
    %c0_29 = arith.constant 0 : index
    %72 = memref.load %arg8[%c0_29] : memref<1xf32, #tpu.memory_space<smem>>
    memref.store %71, %arg8[%c0_29] : memref<1xf32, #tpu.memory_space<smem>>
    return
  }
}

</mosaic_0001>

<bundles_post_ra>
// kernel: _fused_elbo.1
= control target key start
LH: loop header
LB: loop body
LE: loop exit
PB: predicated region body
PF: predicated region fallthrough
CT: control target
= control target key end

     0   :  { %13 = vsyncpa [#allocation3], 0  ;;  %s797_s0 = inlined_call_operand.hbm [shape: f32[8,32], index: 0, kind: input, shape index: {}]   ;;  %s798_s1 = inlined_call_operand.hbm [shape: f32[8,256], index: 1, kind: input, shape index: {}]   ;;  %s799_s2 = inlined_call_operand.hbm [shape: f32[32,128], index: 2, kind: input, shape index: {}]   ;;  %s800_s3 = inlined_call_operand.hbm [shape: f32[32,128], index: 3, kind: input, shape index: {}]   ;;  %s801_s4 = inlined_call_operand.vmem [shape: f32[1,128], index: 4, kind: input, shape index: {}]   ;;  %s802_s5 = inlined_call_operand.vmem [shape: f32[1,128], index: 5, kind: input, shape index: {}]   ;;  %s803_s6 = inlined_call_operand.hbm [shape: f32[32,256], index: 6, kind: input, shape index: {}]   ;;  %s804_s7 = inlined_call_operand.vmem [shape: f32[1,256], index: 7, kind: input, shape index: {}]   ;;  %s805_s8 = inlined_call_operand.hbm [shape: f32[1], index: 8, kind: output, shape index: {}]  }
   0x1   :  { %14 = vsyncpa [#allocation6], 0 }
   0x2   :  { %15 = vsyncpa [#allocation9], 0  ;;  %s33_s29 = sshll.u32 %s798_s1, 4  ;;  %s34_s29 = int_to_ptr.hbm [resolvable:$true] %s33_s29 }
   0x3   :  { %16 = vsyncpa [#allocation4], 0  ;;  %s597_s30 = smov [#allocation5]   ;;  %s56_s12 = sshll.u32 %s800_s3, 4  ;;  %s57_s12 = int_to_ptr.hbm [resolvable:$true] %s56_s12 }
   0x4   :  { %s35_s9 = sshll.u32 %s597_s30, 4  ;;  %s598_s13 = smov [#allocation8]   ;;  %s36_s9 = int_to_ptr.vmem [resolvable:$true] %s35_s9 }
   0x5   :  { %38 = dma.hbm_to_vmem [thread:$0]  %s34_s29, 256, %s36_s9, [#allocation6]  }
   0x6   :  { %s58_s14 = sshll.u32 %s598_s13, 4  ;;  %s22_s17 = sshll.u32 %s797_s0, 4  ;;  %s59_s14 = int_to_ptr.vmem [resolvable:$true] %s58_s14  ;;  %s23_s17 = int_to_ptr.hbm [resolvable:$true] %s22_s17 }
   0x7   :  { %s599_s1 = smov 128   ;;  %s600_s18 = smov 8  }
   0x8   :  { %64 = dma.hbm_to_vmem [thread:$0]  %s57_s12, 512, %s59_s14, [#allocation9], %s599_s1, %s599_s1, %s600_s18  }
   0x9   :  { %s43_s21 = sshll.u32 %s799_s2, 4  ;;  %s601_s22 = smov [#allocation2]   ;;  %s44_s21 = int_to_ptr.hbm [resolvable:$true] %s43_s21 }
   0xa   :  { %s24_s23 = sshll.u32 %s601_s22, 4  ;;  %s602_s3 = smov [#allocation7]   ;;  %s25_s23 = int_to_ptr.vmem [resolvable:$true] %s24_s23 }
   0xb   :  { %27 = dma.hbm_to_vmem [thread:$0]  %s23_s17, 128, %s25_s23, [#allocation3]  }
   0xc   :  { %s45_s24 = sshll.u32 %s602_s3, 4  ;;  %s73_s0 = sshll.u32 %s803_s6, 4  ;;  %s46_s24 = int_to_ptr.vmem [resolvable:$true] %s45_s24  ;;  %s74_s0 = int_to_ptr.hbm [resolvable:$true] %s73_s0 }
   0xd   :  { %51 = dma.hbm_to_vmem [thread:$0]  %s44_s21, 512, %s46_s24, [#allocation6], %s599_s1, %s599_s1, %s600_s18  }
   0xe   :  { %s603_s27 = smov [#allocation10]   ;;  %s604_s29 = smov 256  }
   0xf   :  { %s75_s28 = sshll.u32 %s603_s27, 4  ;;  %s605_s30 = smov 16   ;;  %s76_s28 = int_to_ptr.vmem [resolvable:$true] %s75_s28 }
  0x10   :  { %81 = dma.hbm_to_vmem [thread:$0]  %s74_s0, 1024, %s76_s28, [#allocation9], %s604_s29, %s604_s29, %s605_s30  }
  0x11   :  { %589 = dma.done.wait [#allocation3], 128  }
  0x12   :  { %590 = vsyncadd [#allocation3], 4294967168 }
  0x13   :  { %591 = dma.done.wait [#allocation6], 768  }
  0x14   :  { %592 = vsyncadd [#allocation6], 4294966528 }
  0x15   :  { %593 = dma.done.wait [#allocation9], 1536  }
  0x16   :  { %594 = vsyncadd [#allocation9], 4294965760  ;;  %v667_v0 = vld [vmem:[#allocation8 + $0x18] sm:$0xff]  ;;  %v670_v2 = vld [vmem:[#allocation8 + $0x10] sm:$0xff]  ;;  %vm221_vm8 = vcmask 261120   ;;  %vm331_vm11 = vcmask 1040384  }
  0x17   :  { %v115_v1 = vmin.f32 %v667_v0, 20.0  ;;  %v114_v3 = vmin.f32 %v670_v2, 20.0  ;;  %v673_v4 = vld [vmem:[#allocation8 + $0x8] sm:$0xff]  ;;  %v676_v8 = vld [vmem:[#allocation8] sm:$0xff]  ;;  %vm111_vm0 = vcmp.gt.f32.partialorder %v667_v0, 20.0  ;;  %v684_v33 = vld [vmem:[#allocation10 + $0x30] sm:$0xff] }
  0x18   :  { %v113_v6 = vmin.f32 %v673_v4, 20.0  ;;  %v112_v10 = vmin.f32 %v676_v8, 20.0  ;;  %v183_v35 = vld [vmem:[#allocation10 + $0x20] sm:$0xff]  ;;  %vm110_vm2 = vcmp.gt.f32.partialorder %v670_v2, 20.0  ;;  %v184_v41 = vld [vmem:[#allocation10 + $0x28] sm:$0xff]  ;;  %v691_v44 = vld [vmem:[#allocation10 + $0x38] sm:$0xff] }
  0x19   :  { %v122_v5 = vmul.f32 1.442695, %v115_v1  ;;  %v120_v7 = vmul.f32 1.442695, %v114_v3  ;;  %v693_v46 = vmul.f32 %v183_v35, %v183_v35  ;;  %v695_v47 = vmul.f32 %v184_v41, %v184_v41  ;;  %v181_v49 = vld [vmem:[#allocation10 + $0x10] sm:$0xff]  ;;  %v191_v54 = vld [vmem:[#allocation7 + $0x18] sm:$0xff] }
  0x1a   :  { %v118_v9 = vmul.f32 1.442695, %v113_v6  ;;  %v116_v11 = vmul.f32 1.442695, %v112_v10  ;;  %vm109_vm5 = vcmp.gt.f32.partialorder %v673_v4, 20.0  ;;  %v704_v52 = vmul.f32 %v181_v49, %v181_v49  ;;  %v190_v62 = vld [vmem:[#allocation7 + $0x10] sm:$0xff] }
  0x1b   :  { %427 = vpow2.f32 %v122_v5  ;;  %v189_v6 = vld [vmem:[#allocation7 + $0x8] sm:$0xff]  ;;  %vm108_vm7 = vcmp.gt.f32.partialorder %v676_v8, 20.0  ;;  %s392_s23 = sshll.u32 %s805_s8, 4  ;;  %s606_s25 = smov [#allocation11]   ;;  %s393_s23 = int_to_ptr.hbm [resolvable:$true] %s392_s23 }
  0x1c   :  { %429 = vpow2.f32 %v120_v7  ;;  %v187_v57 = vld [vmem:[%s804_s7] sm:$0x3] }
  0x1d   :  { %431 = vpow2.f32 %v118_v9 }
  0x1e   :  { %433 = vpow2.f32 %v116_v11 }
  0x21   :  { %v428_v12 = vpop.eup %427 }
  0x22   :  { %v430_v13 = vpop.eup %429  ;;  %v151_v14 = vadd.f32 1.0, %v428_v12  ;;  %v154_v15 = vmul.f32 -0.5, %v428_v12  ;;  %v157_v23 = vand.u32 2147483647, %v428_v12 }
  0x23   :  { %v432_v16 = vpop.eup %431  ;;  %v142_v17 = vadd.f32 1.0, %v430_v13  ;;  %v145_v18 = vmul.f32 -0.5, %v430_v13  ;;  %v148_v25 = vand.u32 2147483647, %v430_v13 }
  0x24   :  { %435 = vlog2.f32 %v151_v14  ;;  %v133_v19 = vadd.f32 1.0, %v432_v16  ;;  %v155_v20 = vadd.f32 1.0, %v154_v15  ;;  %v136_v21 = vmul.f32 -0.5, %v432_v16  ;;  %v434_v22 = vpop.eup %433  ;;  %v179_v15 = vld [vmem:[#allocation10] sm:$0xff] }
  0x25   :  { %437 = vlog2.f32 %v142_v17  ;;  %v146_v24 = vadd.f32 1.0, %v145_v18  ;;  %v124_v27 = vadd.f32 1.0, %v434_v22  ;;  %v127_v28 = vmul.f32 -0.5, %v434_v22 }
  0x26   :  { %439 = vlog2.f32 %v133_v19  ;;  %v137_v26 = vadd.f32 1.0, %v136_v21  ;;  %v139_v29 = vand.u32 2147483647, %v432_v16  ;;  %v156_v30 = vmul.f32 %v428_v12, %v155_v20 }
  0x27   :  { %441 = vlog2.f32 %v124_v27  ;;  %vm680_vm1 = vcmp.lt.f32.partialorder %v157_v23, 0.0004427343  ;;  %v147_v34 = vmul.f32 %v430_v13, %v146_v24  ;;  %v128_v36 = vadd.f32 1.0, %v127_v28  ;;  %v188_v23 = vld [vmem:[#allocation7] sm:$0xff] }
  0x28   :  { %v130_v37 = vand.u32 2147483647, %v434_v22  ;;  %vm687_vm3 = vcmp.lt.f32.partialorder %v148_v25, 0.0004427343  ;;  %v138_v42 = vmul.f32 %v432_v16, %v137_v26  ;;  %vm697_vm4 = vcmp.lt.f32.partialorder %v139_v29, 0.0004427343 }
  0x29   :  { %v129_v56 = vmul.f32 %v434_v22, %v128_v36  ;;  %v289_v18 = vmul.f32 %v179_v15, %v179_v15 }
  0x2a   :  { %v436_v31 = vpop.eup %435  ;;  %vm713_vm6 = vcmp.lt.f32.partialorder %v130_v37, 0.0004427343 }
  0x2b   :  { %v438_v38 = vpop.eup %437  ;;  %v153_v39 = vmul.f32 0.6931472, %v436_v31 }
  0x2c   :  { %v440_v43 = vpop.eup %439  ;;  %v144_v45 = vmul.f32 0.6931472, %v438_v38 }
  0x2d   :  { %v159_v50 = vsel %vm680_vm1, %v156_v30, %v153_v39  ;;  %v135_v51 = vmul.f32 0.6931472, %v440_v43  ;;  %v442_v58 = vpop.eup %441 }
  0x2e   :  { %v709_v53 = vsel %vm111_vm0, %v667_v0, %v159_v50  ;;  %v150_v55 = vsel %vm687_vm3, %v147_v34, %v144_v45  ;;  %v182_v0 = vld [vmem:[#allocation10 + $0x18] sm:$0xff]  ;;  %v126_v7 = vmul.f32 0.6931472, %v442_v58  ;;  %v218_v34 = vld [vmem:[#allocation2] sm:$0xff] }
  0x2f   :  { %v198_v59 = vmul.f32 %v684_v33, %v709_v53  ;;  %v199_v60 = vmul.f32 %v691_v44, %v709_v53  ;;  %v724_v61 = vsel %vm110_vm2, %v670_v2, %v150_v55  ;;  %v141_v63 = vsel %vm697_vm4, %v138_v42, %v135_v51  ;;  %v164_v42 = vld [vmem:[%s802_s5] sm:$0x1] }
  0x30   :  { %v196_v1 = vmul.f32 %v183_v35, %v724_v61  ;;  %v197_v3 = vmul.f32 %v184_v41, %v724_v61  ;;  %v733_v5 = vsel %vm109_vm5, %v673_v4, %v141_v63  ;;  %v132_v14 = vsel %vm713_vm6, %v129_v56, %v126_v7  ;;  %v180_v4 = vld [vmem:[#allocation10 + $0x8] sm:$0xff] }
  0x31   :  { %v735_v9 = vadd.f32 %v198_v59, %v191_v54  ;;  %v737_v2 = vadd.f32 %v199_v60, %v191_v54  ;;  %v194_v10 = vmul.f32 %v181_v49, %v733_v5  ;;  %v195_v13 = vmul.f32 %v182_v0, %v733_v5  ;;  %v208_v63 = vld [vmem:[%s801_s4] sm:$0x1] }
  0x32   :  { %v204_v11 = vadd.f32 %v196_v1, %v190_v62  ;;  %v205_v12 = vadd.f32 %v197_v3, %v190_v62  ;;  %v746_v17 = vmul.f32 %v182_v0, %v182_v0  ;;  %v160_v22 = vsel %vm108_vm7, %v676_v8, %v132_v14 }
  0x33   :  { %237 = vmatpush.msra.mxu0 %v735_v9  ;;  %257 = vmatpush.msra.mxu1 %v737_v2  ;;  %v202_v16 = vadd.f32 %v194_v10, %v189_v6  ;;  %v203_v21 = vadd.f32 %v195_v13, %v189_v6  ;;  %v192_v25 = vmul.f32 %v179_v15, %v160_v22  ;;  %v166_v43 = vmin.f32 %v164_v42, 20.0 }
  0x34   :  { %v748_v19 = vmul.f32 %v204_v11, %v204_v11  ;;  %v750_v20 = vmul.f32 %v205_v12, %v205_v12  ;;  %v193_v26 = vmul.f32 %v180_v4, %v160_v22  ;;  %v290_v30 = vmul.f32 %v180_v4, %v180_v4 }
  0x35   :  { %238 = vmatpush.msra.mxu0 %v204_v11  ;;  %258 = vmatpush.msra.mxu1 %v205_v12  ;;  %v283_v24 = vmul.f32 %v202_v16, %v202_v16  ;;  %v757_v29 = vmul.f32 %v203_v21, %v203_v21  ;;  %v200_v8 = vadd.f32 %v192_v25, %v188_v23  ;;  %v167_v45 = vmul.f32 1.442695, %v166_v43 }
  0x36   :  { %v301_v27 = vsub.f32 %v748_v19, %v693_v46  ;;  %v302_v28 = vsub.f32 %v750_v20, %v695_v47  ;;  %v201_v32 = vadd.f32 %v193_v26, %v188_v23  ;;  %vm165_vm10 = vcmp.gt.f32.partialorder %v164_v42, 20.0 }
  0x37   :  { %239 = vmatpush.msra.mxu0 %v202_v16  ;;  %v299_v31 = vsub.f32 %v283_v24, %v704_v52  ;;  %259 = vmatpush.msra.mxu1 %v203_v21  ;;  %v300_v35 = vsub.f32 %v757_v29, %v746_v17  ;;  %v281_v36 = vmul.f32 %v200_v8, %v200_v8  ;;  %443 = vpow2.f32 %v167_v45  ;;  %v265_v45 = vld [vmem:[#allocation5] sm:$0xff] }
  0x38   :  { %v282_v37 = vmul.f32 %v201_v32, %v201_v32  ;;  %v210_v59 = vperm.slane %v187_v57, 0  ;;  %v211_v0 = vperm.slane %v187_v57, 1  ;;  %v323_v7 = vmul.f32 %v187_v57, %v187_v57 }
  0x39   :  { %240 = vmatpush.msra.mxu0 %v200_v8  ;;  %260 = vmatpush.msra.mxu1 %v201_v32  ;;  %v297_v38 = vsub.f32 %v281_v36, %v289_v18  ;;  %v287_v25 = vmul.f32 %v735_v9, %v735_v9  ;;  %v288_v32 = vmul.f32 %v737_v2, %v737_v2 }
  0x3a   :  { %405 = vmatmul.msk.f32.vlgmr.msra.gmra.mxu0 %vm221_vm8, %v218_v34  ;;  %406 = vmatmul.msk.f32.vlgmr.msra.gmra.mxu1 %vm221_vm8, %v218_v34  ;;  %v298_v39 = vsub.f32 %v282_v37, %v290_v30  ;;  %v325_v12 = vperm.slane %v323_v7, 0  ;;  %v326_v13 = vperm.slane %v323_v7, 1  ;;  %v296_v9 = vmul.f32 %v691_v44, %v691_v44 }
  0x3c   :  { %v305_v40 = vadd.f32 %v298_v39, %v297_v38  ;;  %v304_v2 = vsub.f32 %v288_v32, %v296_v9 }
  0x3d   :  { %v444_v48 = vpop.eup %443 }
  0x3e   :  { %v306_v41 = vadd.f32 %v305_v40, %v299_v31  ;;  %v169_v49 = vadd.f32 1.0, %v444_v48  ;;  %v172_v50 = vmul.f32 -0.5, %v444_v48  ;;  %v175_v54 = vand.u32 2147483647, %v444_v48 }
  0x40   :  { %445 = vlog2.f32 %v169_v49  ;;  %v173_v51 = vadd.f32 1.0, %v172_v50  ;;  %vm176_vm9 = vcmp.lt.f32.partialorder %v175_v54, 0.0004427343  ;;  %v307_v36 = vadd.f32 %v306_v41, %v300_v35 }
  0x41   :  { %447 = vlog2.f32 %v733_v5 }
  0x42   :  { %v174_v56 = vmul.f32 %v444_v48, %v173_v51  ;;  %449 = vlog2.f32 %v160_v22  ;;  %v266_v48 = vld [vmem:[#allocation5 + $0x8] sm:$0xff] }
  0x43   :  { %451 = vlog2.f32 %v724_v61  ;;  %v295_v61 = vmul.f32 %v684_v33, %v684_v33  ;;  %v308_v33 = vadd.f32 %v307_v36, %v301_v27 }
  0x44   :  { %453 = vlog2.f32 %v709_v53 }
  0x45   :  { %v303_v39 = vsub.f32 %v287_v25, %v295_v61  ;;  %v309_v17 = vadd.f32 %v308_v33, %v302_v28 }
  0x46   :  { %v446_v52 = vpop.eup %445 }
  0x47   :  { %v171_v55 = vmul.f32 0.6931472, %v446_v52  ;;  %v448_v4 = vpop.eup %447  ;;  %v310_v29 = vadd.f32 %v309_v17, %v303_v39 }
  0x48   :  { %v450_v16 = vpop.eup %449  ;;  %v349_v23 = vmul.f32 0.6931472, %v448_v4 }
  0x49   :  { %v177_v58 = vsel %vm176_vm9, %v174_v56, %v171_v55  ;;  %v347_v22 = vmul.f32 0.6931472, %v450_v16  ;;  %v452_v24 = vpop.eup %451  ;;  %v311_v35 = vadd.f32 %v310_v29, %v304_v2 }
  0x4a   :  { %v178_v60 = vsel %vm165_vm10, %v164_v42, %v177_v58  ;;  %v351_v26 = vmul.f32 0.6931472, %v452_v24  ;;  %v454_v31 = vpop.eup %453 }
  0x4b   :  { %v214_v62 = vmul.f32 %v210_v59, %v178_v60  ;;  %v215_v3 = vmul.f32 %v211_v0, %v178_v60  ;;  %455 = vlog2.f32 %v178_v60  ;;  %v354_v30 = vadd.f32 %v349_v23, %v347_v22 }
  0x4c   :  { %v353_v53 = vmul.f32 0.6931472, %v454_v31 }
  0x4d   :  { %v216_v1 = vadd.f32 %v214_v62, %v208_v63  ;;  %v217_v6 = vadd.f32 %v215_v3, %v208_v63  ;;  %v355_v34 = vadd.f32 %v354_v30, %v351_v26 }
  0x4f   :  { %v321_v10 = vmul.f32 %v216_v1, %v216_v1  ;;  %v322_v11 = vmul.f32 %v217_v6, %v217_v6  ;;  %v356_v38 = vadd.f32 %v355_v34, %v353_v53  ;;  %v219_v41 = vperm.slane %v216_v1, 0 }
  0x50   :  { %v220_v42 = vperm.slane %v217_v6, 0 }
  0x51   :  { %v329_v14 = vsub.f32 %v321_v10, %v325_v12  ;;  %v330_v15 = vsub.f32 %v322_v11, %v326_v13  ;;  %v456_v8 = vpop.eup %455 }
  0x52   :  { %v367_v37 = vmul.f32 0.6931472, %v456_v8 }
  0x53   :  { %v332_v18 = vsel %vm331_vm11, %v329_v14, 0.0  ;;  %v333_v21 = vsel %vm331_vm11, %v330_v15, 0.0 }
  0x54   :  { %v334_v5 = vadd.f32 %v333_v21, %v332_v18  ;;  %v368_v40 = vsel %vm331_vm11, %v367_v37, 0.0 }
  0x55   :  { %369 = vadd.xlane.f32.xlu2 %v368_v40 }
  0x56   :  { %335 = vadd.xlane.f32.xlu1 %v334_v5 }
  0x5e   :  { %357 = vadd.xlane.f32.xlu1 %v356_v38 }
  0xb7   :  { %v242_v43 = vpop.f32.mrf.mxu0  ;;  %v262_v44 = vpop.f32.mrf.mxu1 }
  0xb8   :  { %v243_v49 = vadd.f32 %v242_v43, %v219_v41  ;;  %v263_v46 = vadd.f32 %v262_v44, %v220_v42 }
  0xba   :  { %v267_v19 = vsub.f32 %v243_v49, %v265_v45  ;;  %v268_v27 = vsub.f32 %v263_v46, %v266_v48 }
  0xbc   :  { %v269_v50 = vmul.f32 %v267_v19, %v267_v19  ;;  %v270_v51 = vmul.f32 %v268_v27, %v268_v27 }
  0xbe   :  { %v271_v52 = vadd.f32 %v270_v51, %v269_v50 }
  0xc0   :  { %272 = vadd.xlane.f32.xlu0 %v271_v52 }
  0xc8   :  { %312 = vadd.xlane.f32.xlu0 %v311_v35  ;;  %v370_v20 = vpop.xlane.xlu2 %369 }
  0xc9   :  { %v336_v54 = vpop.xlane.xlu1 %335  ;;  %v371_v58 = vrot.slane %v370_v20, 4 }
  0xca   :  { %v337_v28 = vrot.slane %v336_v54, 4 }
  0xcb   :  { %v372_v0 = vadd.f32 %v371_v58, %v370_v20 }
  0xcc   :  { %v338_v60 = vadd.f32 %v337_v28, %v336_v54 }
  0xcd   :  { %v373_v12 = vrot.slane %v372_v0, 2 }
  0xce   :  { %v339_v3 = vrot.slane %v338_v60, 2 }
  0xcf   :  { %v374_v18 = vadd.f32 %v373_v12, %v372_v0 }
  0xd0   :  { %v340_v15 = vadd.f32 %v339_v3, %v338_v60 }
  0xd1   :  { %v358_v47 = vpop.xlane.xlu1 %357  ;;  %v375_v24 = vrot.slane %v374_v18, 1 }
  0xd2   :  { %v359_v57 = vrot.slane %v358_v47, 4  ;;  %v341_v5 = vrot.slane %v340_v15, 1 }
  0xd3   :  { %v376_v30 = vadd.f32 %v375_v24, %v374_v18 }
  0xd4   :  { %v360_v63 = vadd.f32 %v359_v57, %v358_v47  ;;  %v342_v61 = vadd.f32 %v341_v5, %v340_v15 }
  0xd6   :  { %v361_v7 = vrot.slane %v360_v63, 2 }
  0xd8   :  { %v362_v4 = vadd.f32 %v361_v7, %v360_v63 }
  0xda   :  { %v363_v23 = vrot.slane %v362_v4, 1 }
  0xdc   :  { %v364_v26 = vadd.f32 %v363_v23, %v362_v4 }
 0x133   :  { %v273_v55 = vpop.xlane.xlu0 %272 }
 0x134   :  { %v274_v56 = vrot.slane %v273_v55, 4 }
 0x136   :  { %v275_v59 = vadd.f32 %v274_v56, %v273_v55 }
 0x138   :  { %v276_v62 = vrot.slane %v275_v59, 2 }
 0x13a   :  { %v277_v1 = vadd.f32 %v276_v62, %v275_v59 }
 0x13b   :  { %v313_v6 = vpop.xlane.xlu0 %312 }
 0x13c   :  { %v314_v10 = vrot.slane %v313_v6, 4  ;;  %v278_v11 = vrot.slane %v277_v1, 1 }
 0x13e   :  { %v315_v13 = vadd.f32 %v314_v10, %v313_v6  ;;  %v279_v14 = vadd.f32 %v278_v11, %v277_v1 }
 0x140   :  { %v316_v16 = vrot.slane %v315_v13, 2  ;;  %407 = vpush %v279_v14 }
 0x142   :  { %v317_v21 = vadd.f32 %v316_v16, %v315_v13 }
 0x144   :  { %v318_v22 = vrot.slane %v317_v21, 1 }
 0x146   :  { %v319_v25 = vadd.f32 %v318_v22, %v317_v21 }
 0x148   :  { %409 = vpush %v319_v25 }
 0x149   :  { %411 = vpush %v342_v61 }
 0x14a   :  { %413 = vpush %v364_v26 }
 0x14b   :  { %415 = vpush %v376_v30 }
 0x171   :  { %s408_s4 = spop %407 }
 0x172   :  { %s379_s19 = smul.f32 0.0078125, %s408_s4 }
 0x179   :  { %s410_s7 = spop %409 }
 0x17a   :  { %s412_s12 = spop %411 }
 0x17b   :  { %s344_s13 = sadd.f32 %s412_s12, %s410_s7  ;;  %s414_s14 = spop %413 }
 0x17c   :  { %s416_s15 = spop %415 }
 0x17d   :  { %s345_s16 = smul.f32 0.5, %s344_s13  ;;  %s378_s17 = sadd.f32 %s416_s15, %s414_s14 }
 0x17f   :  { %s380_s1 = smul.f32 2.0, %s378_s17 }
 0x181   :  { %s381_s18 = ssub.f32 %s345_s16, %s380_s1 }
 0x183   :  { %s382_s20 = smul.f32 0.0125, %s381_s18 }
 0x185   :  { %s383_s3 = sadd.f32 %s382_s20, %s379_s19 }
 0x187   :  { %s384_s24 = smul.f32 0.5, %s383_s3 }
 0x189   :  { %386 = sst [smem:[#allocation11]] %s384_s24 }
 0x18a   :  { %395 = dma.smem_to_hbm %s606_s25, 16, %s393_s23, [#allocation4]  }
 0x18b   :  { %595 = dma.done.wait [#allocation4], 16  }
 0x18c   :  { %596 = vsyncadd [#allocation4], 4294967280 }
 0x18d   :  { %400 = sfence }
 0x18e   :  { %401 = vsyncpa [#allocation3], 1 }
 0x18f   :  { %402 = vsyncpa [#allocation6], 1 }
 0x190   :  { %403 = vsyncpa [#allocation9], 1 }
 0x191   :  { %404 = vsyncpa [#allocation4], 1 }

</bundles_post_ra>
